<compile_context>
chip_gen: v5e
topology: v5e:2x2
jax: 0.10.0
libtpu: 0.0.40
codegen_flags: <defaults>
</compile_context>

<pallas_src>
import functools

import jax
import jax.numpy as jnp
from jax import lax
from jax.experimental import pallas as pl
from jax.experimental.pallas import tpu as pltpu


def ea_head_kernel(x_ref, wk_ref, wv_ref, o_ref, *, n_valid):
    """One grid step processes a tile of `bt` batch elements.

    x_ref : (bt, C, Npad)   activations, channels on sublanes, spatial on lanes
    wk_ref: (K, C)          folded weight  Wk @ W1   (bias dropped, see header)
    wv_ref: (C_aug, K)      [Wv ; ones-row ; zero pad rows]  (C_aug = rup(C+1, 8))
    o_ref : (bt, C, Npad)
    """
    bt, c, n_pad = o_ref.shape
    k_dim = wk_ref.shape[0]

    # Keep weights in their input dtype (bf16 MXU path when the model is bf16);
    # only softmax / scaling math runs in f32 via preferred_element_type.
    wk = wk_ref[...]                  # (K, C)
    wv = wv_ref[...]                  # (C_aug, K)

    # Spatial-padding mask (static branch: folds away when Npad == N).
    if n_valid < n_pad:
        lane_idx = lax.broadcasted_iota(jnp.int32, (k_dim, n_pad), 1)
        pad_mask = lane_idx < n_valid
    else:
        pad_mask = None

    def body(b, carry):
        x = x_ref[b]                                                   # (C, Npad)

        # scores = (Wk W1) @ x ; f32 accumulation on the MXU.
        scores = jnp.dot(wk, x, preferred_element_type=jnp.float32)   # (K, Npad)
        if pad_mask is not None:
            scores = jnp.where(pad_mask, scores, -1e30)

        # Numerically stable softmax over the spatial (lane) axis; divide is an
        # EUP approx-reciprocal + VPU multiply.
        scores = scores - jnp.max(scores, axis=-1, keepdims=True)
        e = jnp.exp(scores)                                            # (K, Npad) f32
        inv_row = pl.reciprocal(jnp.sum(e, axis=-1, keepdims=True), approx=True)
        attn = (e * inv_row).astype(wv.dtype)                          # (K, Npad)

        # One MXU call produces out rows [0:C) AND the attention column sum
        # (the all-ones row C of wv_ref); padded zero rows are discarded.
        out_full = jnp.dot(wv, attn, preferred_element_type=jnp.float32)  # (C_aug, Npad)
        col_sum = out_full[c:c + 1, :] + 1e-9                          # (1, Npad)
        # Exact reciprocal here: it is a single vreg row, and on padded lanes
        # col_sum == 1e-9 -> 1e9, which multiplies an exact f32 zero (exp
        # underflow) and is sliced off in the wrapper anyway.
        out = out_full[:c, :] * pl.reciprocal(col_sum, approx=False)   # (C, Npad)

        o_ref[b] = (out + x.astype(jnp.float32)).astype(o_ref.dtype)
        return carry

    if bt == 1:
        body(0, 0)
    else:
        # fori_loop (vs. a fully unrolled Python loop) bounds per-iteration
        # live ranges of the (K, Npad) / (C_aug, Npad) f32 intermediates so
        # regalloc does not spill; unroll=2 keeps LLO scheduling visibility.
        lax.fori_loop(0, bt, body, 0, unroll=2)


def _round_up(v, m):
    return ((v + m - 1) // m) * m


def _vmem_limit_bytes():
    """Half of physical VMEM: ~32 MiB on v7x (64 MiB chips), 64 MiB on v5e/v6e."""
    try:
        physical = pltpu.get_tpu_info().vmem_capacity_bytes
    except Exception:
        physical = 64 << 20          # conservative (v7x-sized) fallback
    return int(min(max(physical // 2, 32 << 20), 96 << 20))


def _pick_batch_tile(batch, c, n_pad, itemsize, k, c_aug, vmem_budget):
    """Largest batch tile that (a) divides the batch, (b) keeps >= 2 grid steps
    (so both v7x TensorCores get work), (c) fits double-buffered in/out blocks
    plus f32 intermediates and weights under `vmem_budget`, and (d) stops
    growing once the x block passes the ~4 MiB amortization plateau."""
    inter_bytes = 4 * (4 * k + 2 * c_aug) * n_pad        # scores/e/attn/mask + out rows (f32)
    weight_bytes = 2 * itemsize * (k * c + c_aug * k)    # double-buffered weight blocks
    best = 1
    max_bt = batch if batch < 2 else batch // 2          # keep >= 2 grid steps
    for bt in range(1, max_bt + 1):
        if batch % bt:
            continue
        io_bytes = 4 * bt * c * n_pad * itemsize         # 2x double-buffered in + out
        if io_bytes + inter_bytes + weight_bytes > vmem_budget:
            break
        best = bt
        if bt * c * n_pad * itemsize >= (4 << 20):        # big enough to hide step overhead
            break
    return best


def ea_head(x_nchw, w1, b1, wk, wv, *, batch_tile=None):
    """x_nchw: (B, C, H, W). w1: (C, C), b1: (C,), wk: (K, C), wv: (C, K)."""
    del b1  # the folded bias Wk @ b1 is constant along the softmax axis -> cancels
    B, C, H, W = x_nchw.shape
    K = wk.shape[0]
    N = H * W
    n_pad = max(128, _round_up(N, 128))                  # lane-dense spatial axis

    # Fold first_conv into k_linear (fold in f32, store in the activation dtype).
    wk_f = jnp.dot(wk.astype(jnp.float32), w1.astype(jnp.float32)).astype(x_nchw.dtype)

    # Augment Wv with an all-ones row (attn column sum) and pad rows to a
    # multiple of 8 sublanes.
    C_aug = _round_up(C + 1, 8)
    wv_aug = jnp.zeros((C_aug, K), jnp.float32)
    wv_aug = wv_aug.at[:C].set(wv.astype(jnp.float32))
    wv_aug = wv_aug.at[C].set(1.0)
    wv_aug = wv_aug.astype(x_nchw.dtype)

    x_flat = x_nchw.reshape(B, C, N)
    if n_pad != N:
        x_flat = jnp.pad(x_flat, ((0, 0), (0, 0), (0, n_pad - N)))

    vmem_limit = _vmem_limit_bytes()
    itemsize = x_flat.dtype.itemsize
    if batch_tile is None:
        bt = _pick_batch_tile(B, C, n_pad, itemsize, K, C_aug,
                              vmem_budget=int(vmem_limit * 0.75))
    else:
        bt = batch_tile
    assert B % bt == 0, "batch_tile must divide the batch size"

    kernel = functools.partial(ea_head_kernel, n_valid=N)

    cost = pl.CostEstimate(
        flops=2 * B * n_pad * (K * C + C_aug * K),        # two MXU matmuls per element
        transcendentals=B * K * n_pad,                     # exp
        bytes_accessed=2 * B * C * n_pad * itemsize + itemsize * (K * C + C_aug * K),
    )

    # TODO(synk): for very large H*W (e.g. 112x112 with C >= 512) add a second
    # grid axis over Npad with a two-pass / online softmax so one block fits
    # v7x's 64 MiB VMEM; the Wv matmul, col_sum, scale and residual are all
    # column-local and tile trivially.
    out_flat = pl.pallas_call(
        kernel,
        out_shape=jax.ShapeDtypeStruct((B, C, n_pad), x_nchw.dtype),
        grid_spec=pltpu.PrefetchScalarGridSpec(
            num_scalar_prefetch=0,
            grid=(B // bt,),
            in_specs=[
                pl.BlockSpec((bt, C, n_pad), lambda i: (i, 0, 0)),   # x
                pl.BlockSpec((K, C), lambda i: (0, 0)),              # Wk @ W1
                pl.BlockSpec((C_aug, K), lambda i: (0, 0)),          # [Wv ; ones]
            ],
            out_specs=pl.BlockSpec((bt, C, n_pad), lambda i: (i, 0, 0)),
        ),
        compiler_params=pltpu.CompilerParams(
            # "parallel" lets Mosaic shard the batch axis over the two v7x
            # TensorCores; _pick_batch_tile keeps >= 2 grid steps.
            # TODO(synk): switch this axis to pltpu.CORE_PARALLEL if profiling
            # shows it is not actually split on v7x.
            dimension_semantics=("parallel",),
            vmem_limit_bytes=vmem_limit,
        ),
        cost_estimate=cost,
    )(x_flat, wk_f, wv_aug)

    return out_flat[:, :, :N].reshape(B, C, H, W)


def ea_head_ref(x_nchw, w1, b1, wk, wv):
    """Pure-JAX reference mirroring the PyTorch forward (including the bias)."""
    B, C, H, W = x_nchw.shape
    x = x_nchw.reshape(B, C, H * W).astype(jnp.float32)
    y = jnp.einsum("oc,bcn->bon", w1, x) + b1[None, :, None]
    attn = jnp.einsum("kc,bcn->bkn", wk, y)
    attn = jax.nn.softmax(attn, axis=-1)
    attn = attn / (jnp.sum(attn, axis=1, keepdims=True) + 1e-9)
    out = jnp.einsum("ck,bkn->bcn", wv, attn)
    return (out + x).reshape(B, C, H, W).astype(x_nchw.dtype)


if __name__ == "__main__":
    B, C, H, W = 2, 4, 16, 16
    K = 128  # fixed self.k in the module

    key = jax.random.PRNGKey(0)
    kx, kw1, kb1, kwk, kwv = jax.random.split(key, 5)

    x = jax.random.normal(kx, (B, C, H, W), dtype=jnp.float32)
    w1 = jax.random.normal(kw1, (C, C), dtype=jnp.float32) * 0.1   # Conv2d(c, c, 1)
    b1 = jax.random.normal(kb1, (C,), dtype=jnp.float32) * 0.1
    wk = jax.random.normal(kwk, (K, C), dtype=jnp.float32) * 0.1   # Conv1d(c, k, 1)
    wv = jax.random.normal(kwv, (C, K), dtype=jnp.float32) * 0.1   # Conv1d(k, c, 1)

    out = jax.block_until_ready(ea_head(x, w1, b1, wk, wv))
    ref = ea_head_ref(x, w1, b1, wk, wv)
    assert out.shape == (B, C, H, W)
    assert jnp.allclose(out, ref, atol=2e-3, rtol=2e-3), float(
        jnp.max(jnp.abs(out - ref)))

    # Non-lane-dense spatial path (14*14 = 196 -> padded to 256).
    x2 = jax.random.normal(kx, (B, C, 14, 14), dtype=jnp.float32)
    out2 = jax.block_until_ready(ea_head(x2, w1, b1, wk, wv))
    ref2 = ea_head_ref(x2, w1, b1, wk, wv)
    assert jnp.allclose(out2, ref2, atol=2e-3, rtol=2e-3), float(
        jnp.max(jnp.abs(out2 - ref2)))

    # Batch-tiled path (bt > 1) exercising the in-kernel fori_loop.
    x3 = jax.random.normal(kx, (8, C, H, W), dtype=jnp.float32)
    out3 = jax.block_until_ready(ea_head(x3, w1, b1, wk, wv, batch_tile=2))
    ref3 = ea_head_ref(x3, w1, b1, wk, wv)
    assert jnp.allclose(out3, ref3, atol=2e-3, rtol=2e-3), float(
        jnp.max(jnp.abs(out3 - ref3)))

    print("KERNEL_OK")
</pallas_src>

<mosaic_0001>
module attributes {stable_mosaic.version = 11 : i64} {
  func.func @ea_head_kernel(%arg0: i32, %arg1: memref<1x4x256xf32, #tpu.memory_space<vmem>>, %arg2: memref<128x4xf32, #tpu.memory_space<vmem>>, %arg3: memref<8x128xf32, #tpu.memory_space<vmem>>, %arg4: memref<1x4x256xf32, #tpu.memory_space<vmem>>) attributes {dimension_semantics = [#tpu.dimension_semantics<parallel>], iteration_bounds = array<i64: 2>, scalar_prefetch = 0 : i64, scratch_operands = 0 : i64, tpu.core_type = #tpu.core_type<tc>, window_params = [{transform_indices = @transform_0, window_bounds = array<i64: 1, 4, 256>}, {pipeline_mode = #tpu.pipeline_mode<synchronous>, transform_indices = @transform_1, window_bounds = array<i64: 128, 4>}, {pipeline_mode = #tpu.pipeline_mode<synchronous>, transform_indices = @transform_2, window_bounds = array<i64: 8, 128>}, {transform_indices = @transform_3, window_bounds = array<i64: 1, 4, 256>}]} {
    %c0 = arith.constant 0 : index
    %c0_0 = arith.constant 0 : index
    %0 = vector.load %arg2[%c0, %c0_0] : memref<128x4xf32, #tpu.memory_space<vmem>>, vector<128x4xf32>
    %c0_1 = arith.constant 0 : index
    %c0_2 = arith.constant 0 : index
    %1 = vector.load %arg3[%c0_1, %c0_2] : memref<8x128xf32, #tpu.memory_space<vmem>>, vector<8x128xf32>
    %c0_3 = arith.constant 0 : index
    %c0_4 = arith.constant 0 : index
    %c0_5 = arith.constant 0 : index
    %2 = vector.load %arg1[%c0_3, %c0_4, %c0_5] : memref<1x4x256xf32, #tpu.memory_space<vmem>>, vector<1x4x256xf32>
    %3 = vector.shape_cast %2 : vector<1x4x256xf32> to vector<4x256xf32>
    %cst = arith.constant dense<0.000000e+00> : vector<128x256xf32>
    %4 = tpu.matmul %0, %3, %cst {dimension_numbers = #tpu.dot_dimension_numbers<[1], [0], [0], [1], [0, 0, 1, 1], [], []>} : vector<128x4xf32>, vector<4x256xf32>, vector<128x256xf32> -> vector<128x256xf32>
    %cst_6 = arith.constant dense<0xFF800000> : vector<128xf32>
    %5 = vector.multi_reduction <maximumf>, %4, %cst_6 [1] : vector<128x256xf32> to vector<128xf32>
    %6 = vector.shape_cast %5 : vector<128xf32> to vector<128x1xf32>
    %7 = vector.broadcast %6 : vector<128x1xf32> to vector<128x256xf32>
    %8 = arith.subf %4, %7 : vector<128x256xf32>
    %9 = math.exp %8 : vector<128x256xf32>
    %cst_7 = arith.constant dense<0.000000e+00> : vector<128xf32>
    %10 = vector.multi_reduction <add>, %9, %cst_7 [1] : vector<128x256xf32> to vector<128xf32>
    %11 = vector.shape_cast %10 : vector<128xf32> to vector<128x1xf32>
    %12 = tpu.reciprocal %11 {approx = true} : vector<128x1xf32> -> vector<128x1xf32>
    %13 = vector.broadcast %12 : vector<128x1xf32> to vector<128x256xf32>
    %14 = arith.mulf %9, %13 : vector<128x256xf32>
    %cst_8 = arith.constant dense<0.000000e+00> : vector<8x256xf32>
    %15 = tpu.matmul %1, %14, %cst_8 {dimension_numbers = #tpu.dot_dimension_numbers<[1], [0], [0], [1], [0, 0, 1, 1], [], []>} : vector<8x128xf32>, vector<128x256xf32>, vector<8x256xf32> -> vector<8x256xf32>
    %16 = vector.extract_strided_slice %15 {offsets = [4, 0], sizes = [1, 256], strides = [1, 1]} : vector<8x256xf32> to vector<1x256xf32>
    %cst_9 = arith.constant 9.99999971E-10 : f32
    %17 = vector.broadcast %cst_9 : f32 to vector<1x256xf32>
    %18 = arith.addf %16, %17 : vector<1x256xf32>
    %19 = vector.extract_strided_slice %15 {offsets = [0, 0], sizes = [4, 256], strides = [1, 1]} : vector<8x256xf32> to vector<4x256xf32>
    %20 = tpu.reciprocal %18 : vector<1x256xf32> -> vector<1x256xf32>
    %21 = vector.broadcast %20 : vector<1x256xf32> to vector<4x256xf32>
    %22 = arith.mulf %19, %21 : vector<4x256xf32>
    %23 = arith.addf %22, %3 : vector<4x256xf32>
    %c0_10 = arith.constant 0 : index
    %c0_11 = arith.constant 0 : index
    %c0_12 = arith.constant 0 : index
    %24 = vector.load %arg4[%c0_10, %c0_11, %c0_12] : memref<1x4x256xf32, #tpu.memory_space<vmem>>, vector<1x4x256xf32>
    %25 = vector.shape_cast %24 : vector<1x4x256xf32> to vector<4x256xf32>
    %26 = vector.shape_cast %23 : vector<4x256xf32> to vector<1x4x256xf32>
    tpu.vector_store %arg4[%c0_10, %c0_11, %c0_12], %26 {strides = array<i32>} : memref<1x4x256xf32, #tpu.memory_space<vmem>>, vector<1x4x256xf32>,
    return
  }
  func.func @transform_0(%arg0: i32) -> (i32, i32, i32) {
    %c0_i32 = arith.constant 0 : i32
    %c0_i32_0 = arith.constant 0 : i32
    %c0_i32_1 = arith.constant 0 : i32
    return %arg0, %c0_i32, %c0_i32_0 : i32, i32, i32
  }
  func.func @transform_1(%arg0: i32) -> (i32, i32) {
    %c0_i32 = arith.constant 0 : i32
    %c0_i32_0 = arith.constant 0 : i32
    %c0_i32_1 = arith.constant 0 : i32
    return %c0_i32, %c0_i32_0 : i32, i32
  }
  func.func @transform_2(%arg0: i32) -> (i32, i32) {
    %c0_i32 = arith.constant 0 : i32
    %c0_i32_0 = arith.constant 0 : i32
    %c0_i32_1 = arith.constant 0 : i32
    return %c0_i32, %c0_i32_0 : i32, i32
  }
  func.func @transform_3(%arg0: i32) -> (i32, i32, i32) {
    %c0_i32 = arith.constant 0 : i32
    %c0_i32_0 = arith.constant 0 : i32
    %c0_i32_1 = arith.constant 0 : i32
    return %arg0, %c0_i32, %c0_i32_0 : i32, i32, i32
  }
}

</mosaic_0001>

<bundles_post_ra>
// kernel: tpu_custom_call.1
= control target key start
LH: loop header
LB: loop body
LE: loop exit
PB: predicated region body
PF: predicated region fallthrough
CT: control target
= control target key end

     0   :  { %8 = vsyncpa [#allocation3], 0  ;;  %s1476_s0 = inlined_call_operand.vmem [shape: f32[2,4,256], index: 0, kind: input, shape index: {}]   ;;  %s1477_s1 = inlined_call_operand.vmem [shape: f32[128,4], index: 1, kind: input, shape index: {}]   ;;  %s1478_s2 = inlined_call_operand.vmem [shape: f32[8,128], index: 2, kind: input, shape index: {}]   ;;  %s1479_s3 = inlined_call_operand.hbm [shape: f32[2,4,256], index: 3, kind: output, shape index: {}]  }
   0x1   :  { %10 = vsyncpa [#allocation3 + $0x1], 0  ;;  %s1051_s12 = smov 0   ;;  %s1053_s13 = smov 0  }
   0x2   :  { %s1055_s14 = smov 0   ;;  %s1057_s15 = smov 0  }
   0x3 LB: > { %s1072_s16 = sadd.s32 4294967295, %s1029_s15   ;;  %s778_s17 = sadd.s32 4294967294, %s1029_s15   ;;  %s1029_s15 = sphi %s1057_s15, %s1485_s15   ;;  %s1025_s14 = sphi %s1055_s14, %s1484_s14   ;;  %s1021_s13 = sphi %s1053_s13, %s1483_s13   ;;  %s1017_s12 = sphi %s1051_s12, %s1482_s12  }
   0x4   : > { %s1076_s18 = sadd.s32 1, %s1029_s15   ;;  %s91_s19 = sadd.s32 1, %s1025_s14 }
   0x5   : > { %s88_s20 = ssub.s32 %s1029_s15, %s1076_s18  ;;  %p101_p0 = scmp.ne.s32.totalorder %s1025_s14, %s1021_s13 }
   0x6   : > { %p89_p1 = scmp.eq.s32.totalorder %s88_s20, 0  ;;  %p102_p2 = scmp.eq.s32.totalorder %s1072_s16, 1 }
   0x7   : > { %p107_p3 = scmp.ne.s32.totalorder %s1021_s13, %s1017_s12  ;;  %p108_p4 = scmp.eq.s32.totalorder %s778_s17, 1 }
   0x8   : > { %s1087_s21 = scalar_select %p89_p1, %s1025_s14, %s91_s19  }
   0x9   : > { %p1089_p5 = por %p102_p2, %p101_p0  ;;  %p1093_p6 = por %p108_p4, %p107_p3 }
   0xa   : > { %p781_p7 = scmp.ge.s32.totalorder %s1029_s15, 1  ;;  %p140_p8 = scmp.lt.s32.totalorder %s1029_s15, 3 }
   0xc   : > { %p141_p9 = pnand %p781_p7, %p140_p8 }
   0xd   : > { %p164_p10 = scmp.lt.s32.totalorder (!%p141_p9), %s1072_s16, 1  ;;  %s161_s27 = sand.u32 (!%p141_p9), 1, %s1021_s13  }
   0xe   : > { %144 = sbr.rel (%p141_p9) target bundleno = 681 (0x2a9), region = 32  ;;  %s825_s29 = sshll.u32 (!%p141_p9), %s1072_s16, 3 }
   0xf   : > { %s714_s5 = scalar_lea.hbm (!%p141_p9), %s1479_s3, %s825_s29  ;;  %s987_s19 = scalar_lea.hbm (!%p141_p9), %s1479_s3, 16 }
  0x10   : > { %s718_s8 = sshll.u32 (!%p141_p9), %s714_s5, 4  ;;  %s719_s8 = int_to_ptr.hbm [resolvable:$true] %s718_s8 }
  0x11   : > { %s981_s9 = sshra.s32 (!%p141_p9), %s719_s8, 4  ;;  %s982_s9 = int_to_ptr.hbm [resolvable:$true] %s981_s9 }
  0x12   : > { %s983_s10 = scalar_lea.hbm (!%p141_p9), %s982_s9, 8  ;;  %p988_p0 = scmp.lt.s32.totalorder (!%p141_p9), %s982_s9, %s1479_s3 }
  0x13   : > { %s165_s24 = scalar_select %p164_p10, %s1072_s16, 1  ;;  %vm240_vm0 = vcmask 1043456   ;;  %v169_v1 = vld [vmem:[%s1477_s1] sm:$0xff]  ;;  %vm191_vm1 = vcmask 31744   ;;  %v178_v2 = vld [vmem:[%s1477_s1 + $0x48] sm:$0xff]  ;;  %v179_v5 = vld [vmem:[%s1477_s1 + $0x50] sm:$0xff] }
  0x14   : > { %v170_v6 = vld [vmem:[%s1477_s1 + $0x8] sm:$0xff]  ;;  %v180_v7 = vld [vmem:[%s1477_s1 + $0x58] sm:$0xff]  ;;  %v171_v8 = vld [vmem:[%s1477_s1 + $0x10] sm:$0xff]  ;;  %s703_s16 = scalar_lea.sflag [#allocation3], %s161_s27  ;;  %p984_p11 = scmp.ne.s32.totalorder %s982_s9, %s983_s10 }
  0x15   : > { %s824_s25 = sshll.u32 %s165_s24, 3  ;;  %v181_v9 = vld [vmem:[%s1477_s1 + $0x60] sm:$0xff]  ;;  %v172_v10 = vld [vmem:[%s1477_s1 + $0x18] sm:$0xff]  ;;  %v182_v11 = vld [vmem:[%s1477_s1 + $0x68] sm:$0xff]  ;;  %p989_p1 = scmp.lt.s32.totalorder %s987_s19, %s983_s10 }
  0x16   : > { %s168_s28 = scalar_lea.vmem %s1476_s0, %s824_s25  ;;  %v173_v12 = vld [vmem:[%s1477_s1 + $0x20] sm:$0xff]  ;;  %v183_v13 = vld [vmem:[%s1477_s1 + $0x70] sm:$0xff]  ;;  %v174_v14 = vld [vmem:[%s1477_s1 + $0x28] sm:$0xff]  ;;  %p985_p12 = pnand %p984_p11, %p1089_p5 }
  0x17   : > { %v186_v0 = vld [vmem:[%s168_s28] sm:$0xff]  ;;  %v184_v15 = vld [vmem:[%s1477_s1 + $0x78] sm:$0xff]  ;;  %v175_v16 = vld [vmem:[%s1477_s1 + $0x30] sm:$0xff]  ;;  %s782_s28 = sshll.u32 %s161_s27, 3  ;;  %p990_p2 = por %p989_p1, %p988_p0 }
  0x18   : > { %188 = vst [vmem:[#allocation1] ss:$2 sm:$0xff] %v186_v0  ;;  %v176_v17 = vld [vmem:[%s1477_s1 + $0x38] sm:$0xff]  ;;  %v177_v18 = vld [vmem:[%s1477_s1 + $0x40] sm:$0xff]  ;;  %s163_s6 = scalar_lea.vmem [#allocation2], %s782_s28  ;;  %p986_p13 = pneg %p985_p12 }
  0x19   : > { %s716_s7 = sshll.u32 %s163_s6, 4  ;;  %s717_s7 = int_to_ptr.vmem [resolvable:$true] %s716_s7 }
  0x1a   : > { %p991_p3 = pnand %p990_p2, %p986_p13 }
  0x1f   : > { %v189_v3 = vld.sshfl [vmem:[#allocation1] sm:$0xff pattern:$0x75316420]  ;;  %v190_v4 = vld.sshfl [vmem:[#allocation1 + $0x8] sm:$0xff pattern:$0x75316420] }
  0x20   : > { %785 = vmatpush.msk.msra.mxu0 %vm240_vm0, %v189_v3  ;;  %802 = vmatpush.msk.msra.mxu1 %vm240_vm0, %v190_v4  ;;  %689 = vst [vmem:[#allocation1] ss:$2 sm:$0xff] %v186_v0 }
  0x21   : > { %827 = vmatpush.msk.msra.mxu3 %vm240_vm0, %v190_v4  ;;  %786 = vmatmul.msk.f32.vlgmr.msra.gmra.mxu0 %vm191_vm1, %v169_v1 }
  0x22   : > { %803 = vmatmul.msk.f32.vlgmr.msra.gmra.mxu1 %vm191_vm1, %v169_v1  ;;  %812 = vmatmul.msk.f32.vlgmr.msra.gmra.mxu3 %vm191_vm1, %v178_v2 }
  0x23   : > { %826 = vmatpush.msk.msra.mxu2 %vm240_vm0, %v189_v3 }
  0x24   : > { %796 = vmatmul.msk.f32.vlgmr.msra.gmra.mxu2 %vm191_vm1, %v179_v5 }
  0x29   : > { %787 = vmatmul.msk.f32.gmra.mxu0 %vm191_vm1, %v170_v6 }
  0x2a   : > { %804 = vmatmul.msk.f32.gmra.mxu1 %vm191_vm1, %v170_v6  ;;  %813 = vmatmul.msk.f32.gmra.mxu3 %vm191_vm1, %v179_v5 }
  0x2c   : > { %797 = vmatmul.msk.f32.gmra.mxu2 %vm191_vm1, %v180_v7 }
  0x31   : > { %788 = vmatmul.msk.f32.gmra.mxu0 %vm191_vm1, %v171_v8 }
  0x32   : > { %805 = vmatmul.msk.f32.gmra.mxu1 %vm191_vm1, %v171_v8  ;;  %814 = vmatmul.msk.f32.gmra.mxu3 %vm191_vm1, %v180_v7 }
  0x34   : > { %798 = vmatmul.msk.f32.gmra.mxu2 %vm191_vm1, %v181_v9 }
  0x39   : > { %789 = vmatmul.msk.f32.gmra.mxu0 %vm191_vm1, %v172_v10 }
  0x3a   : > { %806 = vmatmul.msk.f32.gmra.mxu1 %vm191_vm1, %v172_v10  ;;  %815 = vmatmul.msk.f32.gmra.mxu3 %vm191_vm1, %v181_v9 }
  0x3c   : > { %799 = vmatmul.msk.f32.gmra.mxu2 %vm191_vm1, %v182_v11 }
  0x41   : > { %790 = vmatmul.msk.f32.gmra.mxu0 %vm191_vm1, %v173_v12 }
  0x42   : > { %807 = vmatmul.msk.f32.gmra.mxu1 %vm191_vm1, %v173_v12  ;;  %816 = vmatmul.msk.f32.gmra.mxu3 %vm191_vm1, %v182_v11 }
  0x44   : > { %800 = vmatmul.msk.f32.gmra.mxu2 %vm191_vm1, %v183_v13 }
  0x49   : > { %791 = vmatmul.msk.f32.gmra.mxu0 %vm191_vm1, %v174_v14 }
  0x4a   : > { %808 = vmatmul.msk.f32.gmra.mxu1 %vm191_vm1, %v174_v14  ;;  %817 = vmatmul.msk.f32.gmra.mxu3 %vm191_vm1, %v183_v13 }
  0x4c   : > { %801 = vmatmul.msk.f32.gmra.mxu2 %vm191_vm1, %v184_v15 }
  0x51   : > { %792 = vmatmul.msk.f32.gmra.mxu0 %vm191_vm1, %v175_v16 }
  0x52   : > { %809 = vmatmul.msk.f32.gmra.mxu1 %vm191_vm1, %v175_v16  ;;  %818 = vmatmul.msk.f32.gmra.mxu3 %vm191_vm1, %v184_v15 }
  0x59   : > { %793 = vmatmul.msk.f32.gmra.mxu0 %vm191_vm1, %v176_v17 }
  0x5a   : > { %810 = vmatmul.msk.f32.gmra.mxu1 %vm191_vm1, %v176_v17 }
  0x61   : > { %794 = vmatmul.msk.f32.gmra.mxu0 %vm191_vm1, %v177_v18 }
  0x62   : > { %811 = vmatmul.msk.f32.gmra.mxu1 %vm191_vm1, %v177_v18 }
  0x69   : > { %795 = vmatmul.msk.f32.gmra.mxu0 %vm191_vm1, %v178_v2 }
  0x9e   : > { %v1188_v19 = vpop.f32.mrf.mxu0 }
  0x9f   : > { %v1190_v20 = vpop.f32.mrf.mxu1 }
  0xa0   : > { %v375_v2 = vmax.f32 %v1188_v19, %v1190_v20 }
  0xa5   : > { %v1192_v21 = vpop.f32.mrf.mxu3 }
  0xa6   : > { %v1194_v22 = vpop.f32.mrf.mxu0 }
  0xa7   : > { %v1196_v23 = vpop.f32.mrf.mxu1  ;;  %v292_v24 = vpop.f32.mrf.mxu2 }
  0xa8   : > { %v378_v61 = vmax.f32 %v1194_v22, %v1196_v23 }
  0xad   : > { %v357_v25 = vpop.f32.mrf.mxu3 }
  0xae   : > { %v1198_v26 = vpop.f32.mrf.mxu0  ;;  %v405_v27 = vmax.f32 %v292_v24, %v357_v25 }
  0xaf   : > { %v1200_v28 = vpop.f32.mrf.mxu1  ;;  %v1202_v29 = vpop.f32.mrf.mxu2 }
  0xb0   : > { %406 = vmax.xlane.f32.xlu2 %v405_v27  ;;  %v381_v0 = vmax.f32 %v1198_v26, %v1200_v28 }
  0xb5   : > { %v1204_v30 = vpop.f32.mrf.mxu3 }
  0xb6   : > { %v1206_v31 = vpop.f32.mrf.mxu0  ;;  %v408_v32 = vmax.f32 %v1202_v29, %v1204_v30 }
  0xb7   : > { %v1210_v33 = vpop.f32.mrf.mxu1  ;;  %v1212_v34 = vpop.f32.mrf.mxu2 }
  0xb8   : > { %409 = vmax.xlane.f32.xlu2 %v408_v32  ;;  %v384_v1 = vmax.f32 %v1206_v31, %v1210_v33 }
  0xbd   : > { %v1214_v35 = vpop.f32.mrf.mxu3 }
  0xbe   : > { %v1216_v36 = vpop.f32.mrf.mxu0  ;;  %v411_v37 = vmax.f32 %v1212_v34, %v1214_v35 }
  0xbf   : > { %v1220_v38 = vpop.f32.mrf.mxu1  ;;  %v1222_v39 = vpop.f32.mrf.mxu2 }
  0xc0   : > { %412 = vmax.xlane.f32.xlu1 %v411_v37  ;;  %v387_v58 = vmax.f32 %v1216_v36, %v1220_v38 }
  0xc5   : > { %v1224_v40 = vpop.f32.mrf.mxu3 }
  0xc6   : > { %v1226_v41 = vpop.f32.mrf.mxu0  ;;  %v414_v42 = vmax.f32 %v1222_v39, %v1224_v40 }
  0xc7   : > { %v1230_v43 = vpop.f32.mrf.mxu1  ;;  %v1232_v44 = vpop.f32.mrf.mxu2 }
  0xc8   : > { %415 = vmax.xlane.f32.xlu1 %v414_v42  ;;  %v390_v62 = vmax.f32 %v1226_v41, %v1230_v43 }
  0xcd   : > { %v1234_v45 = vpop.f32.mrf.mxu3 }
  0xce   : > { %v1236_v46 = vpop.f32.mrf.mxu0  ;;  %v417_v47 = vmax.f32 %v1232_v44, %v1234_v45 }
  0xcf   : > { %v1240_v48 = vpop.f32.mrf.mxu1  ;;  %v1242_v49 = vpop.f32.mrf.mxu2 }
  0xd0   : > { %418 = vmax.xlane.f32.xlu0 %v417_v47  ;;  %v393_v63 = vmax.f32 %v1236_v46, %v1240_v48 }
  0xd5   : > { %v1244_v50 = vpop.f32.mrf.mxu3 }
  0xd6   : > { %v1246_v51 = vpop.f32.mrf.mxu0  ;;  %v420_v52 = vmax.f32 %v1242_v49, %v1244_v50 }
  0xd7   : > { %v1250_v53 = vpop.f32.mrf.mxu1 }
  0xd8   : > { %421 = vmax.xlane.f32.xlu0 %v420_v52  ;;  %v396_v54 = vmax.f32 %v1246_v51, %v1250_v53 }
  0xda   : > { %397 = vmax.xlane.f32.xlu2 %v396_v54 }
  0xde   : > { %v1254_v55 = vpop.f32.mrf.mxu0 }
  0xdf   : > { %v1256_v56 = vpop.f32.mrf.mxu1 }
  0xe0   : > { %v399_v57 = vmax.f32 %v1254_v55, %v1256_v56 }
  0xe2   : > { %388 = vmax.xlane.f32.xlu2 %v387_v58  ;;  %400 = vmax.xlane.f32.xlu1 %v399_v57 }
  0xe6   : > { %v1262_v59 = vpop.f32.mrf.mxu0 }
  0xe7   : > { %v402_v60 = vmax.f32 %v1262_v59, %v1192_v21 }
  0xe9   : > { %403 = vmax.xlane.f32.xlu0 %v402_v60 }
  0xea   : > { %379 = vmax.xlane.f32.xlu2 %v378_v61  ;;  %391 = vmax.xlane.f32.xlu1 %v390_v62 }
  0xf1   : > { %394 = vmax.xlane.f32.xlu0 %v393_v63 }
  0xf2   : > { %382 = vmax.xlane.f32.xlu1 %v381_v0 }
  0xf9   : > { %385 = vmax.xlane.f32.xlu0 %v384_v1 }
 0x101   : > { %376 = vmax.xlane.f32.xlu0 %v375_v2 }
 0x123   : > { %v407_v3 = vpop.xlane.xlu2 %406 }
 0x124   : > { %v443_v4 = vsub.f32 %v292_v24, %v407_v3  ;;  %v444_v5 = vsub.f32 %v357_v25, %v407_v3 }
 0x126   : > { %v495_v6 = vmul.f32 1.442695, %v443_v4  ;;  %v497_v7 = vmul.f32 1.442695, %v444_v5 }
 0x128   : > { %867 = vpow2.f32 %v495_v6 }
 0x129   : > { %869 = vpow2.f32 %v497_v7 }
 0x12b   : > { %v410_v8 = vpop.xlane.xlu2 %409 }
 0x12c   : > { %v445_v9 = vsub.f32 %v1202_v29, %v410_v8  ;;  %v446_v10 = vsub.f32 %v1204_v30, %v410_v8 }
 0x12e   : > { %v1280_v11 = vpop.eup %867  ;;  %v499_v12 = vmul.f32 1.442695, %v445_v9  ;;  %v501_v13 = vmul.f32 1.442695, %v446_v10 }
 0x12f   : > { %v1282_v14 = vpop.eup %869 }
 0x130   : > { %871 = vpow2.f32 %v499_v12  ;;  %v549_v15 = vadd.f32 %v1282_v14, %v1280_v11 }
 0x131   : > { %873 = vpow2.f32 %v501_v13 }
 0x132   : > { %550 = vadd.xlane.f32.xlu0 %v549_v15 }
 0x133   : > { %v413_v16 = vpop.xlane.xlu1 %412 }
 0x134   : > { %v447_v17 = vsub.f32 %v1212_v34, %v413_v16  ;;  %v448_v18 = vsub.f32 %v1214_v35, %v413_v16 }
 0x136   : > { %v1288_v24 = vpop.eup %871  ;;  %v503_v25 = vmul.f32 1.442695, %v447_v17  ;;  %v505_v27 = vmul.f32 1.442695, %v448_v18 }
 0x137   : > { %v1290_v29 = vpop.eup %873 }
 0x138   : > { %875 = vpow2.f32 %v503_v25  ;;  %v552_v30 = vadd.f32 %v1290_v29, %v1288_v24 }
 0x139   : > { %877 = vpow2.f32 %v505_v27 }
 0x13a   : > { %553 = vadd.xlane.f32.xlu2 %v552_v30 }
 0x13b   : > { %v416_v32 = vpop.xlane.xlu1 %415 }
 0x13c   : > { %v449_v37 = vsub.f32 %v1222_v39, %v416_v32  ;;  %v450_v42 = vsub.f32 %v1224_v40, %v416_v32 }
 0x13e   : > { %v1296_v34 = vpop.eup %875  ;;  %v507_v35 = vmul.f32 1.442695, %v449_v37  ;;  %v509_v47 = vmul.f32 1.442695, %v450_v42 }
 0x13f   : > { %v1298_v52 = vpop.eup %877 }
 0x140   : > { %879 = vpow2.f32 %v507_v35  ;;  %v555_v54 = vadd.f32 %v1298_v52, %v1296_v34 }
 0x141   : > { %881 = vpow2.f32 %v509_v47 }
 0x142   : > { %556 = vadd.xlane.f32.xlu1 %v555_v54 }
 0x143   : > { %v419_v57 = vpop.xlane.xlu0 %418 }
 0x144   : > { %v451_v58 = vsub.f32 %v1232_v44, %v419_v57  ;;  %v452_v60 = vsub.f32 %v1234_v45, %v419_v57 }
 0x146   : > { %v1304_v39 = vpop.eup %879  ;;  %v511_v40 = vmul.f32 1.442695, %v451_v58  ;;  %v513_v61 = vmul.f32 1.442695, %v452_v60 }
 0x147   : > { %v1306_v62 = vpop.eup %881 }
 0x148   : > { %883 = vpow2.f32 %v511_v40  ;;  %v558_v63 = vadd.f32 %v1306_v62, %v1304_v39 }
 0x149   : > { %885 = vpow2.f32 %v513_v61 }
 0x14a   : > { %559 = vadd.xlane.f32.xlu0 %v558_v63 }
 0x14b   : > { %v422_v0 = vpop.xlane.xlu0 %421 }
 0x14c   : > { %v453_v1 = vsub.f32 %v1242_v49, %v422_v0  ;;  %v454_v2 = vsub.f32 %v1244_v50, %v422_v0 }
 0x14d   : > { %v398_v44 = vpop.xlane.xlu2 %397 }
 0x14e   : > { %v1312_v3 = vpop.eup %883  ;;  %v515_v45 = vmul.f32 1.442695, %v453_v1  ;;  %v517_v4 = vmul.f32 1.442695, %v454_v2  ;;  %v437_v5 = vsub.f32 %v1246_v51, %v398_v44  ;;  %v438_v6 = vsub.f32 %v1250_v53, %v398_v44 }
 0x14f   : > { %v1316_v7 = vpop.eup %885 }
 0x150   : > { %887 = vpow2.f32 %v515_v45  ;;  %v483_v8 = vmul.f32 1.442695, %v437_v5  ;;  %v485_v9 = vmul.f32 1.442695, %v438_v6  ;;  %v561_v10 = vadd.f32 %v1316_v7, %v1312_v3 }
 0x151   : > { %889 = vpow2.f32 %v517_v4 }
 0x152   : > { %891 = vpow2.f32 %v483_v8  ;;  %562 = vadd.xlane.f32.xlu2 %v561_v10 }
 0x153   : > { %893 = vpow2.f32 %v485_v9 }
 0x155   : > { %v389_v49 = vpop.xlane.xlu2 %388  ;;  %v401_v50 = vpop.xlane.xlu1 %400 }
 0x156   : > { %v1320_v12 = vpop.eup %887  ;;  %v431_v51 = vsub.f32 %v1216_v36, %v389_v49  ;;  %v432_v53 = vsub.f32 %v1220_v38, %v389_v49  ;;  %v439_v13 = vsub.f32 %v1254_v55, %v401_v50  ;;  %v440_v15 = vsub.f32 %v1256_v56, %v401_v50 }
 0x157   : > { %v1326_v16 = vpop.eup %889 }
 0x158   : > { %v1328_v17 = vpop.eup %891  ;;  %v471_v18 = vmul.f32 1.442695, %v431_v51  ;;  %v473_v25 = vmul.f32 1.442695, %v432_v53  ;;  %v487_v27 = vmul.f32 1.442695, %v439_v13  ;;  %v564_v30 = vadd.f32 %v1326_v16, %v1320_v12 }
 0x159   : > { %v1332_v32 = vpop.eup %893  ;;  %v489_v37 = vmul.f32 1.442695, %v440_v15 }
 0x15a   : > { %895 = vpow2.f32 %v471_v18  ;;  %565 = vadd.xlane.f32.xlu1 %v564_v30  ;;  %v540_v36 = vadd.f32 %v1332_v32, %v1328_v17 }
 0x15b   : > { %897 = vpow2.f32 %v473_v25 }
 0x15c   : > { %899 = vpow2.f32 %v487_v27  ;;  %541 = vadd.xlane.f32.xlu0 %v540_v36  ;;  %v404_v38 = vpop.xlane.xlu0 %403 }
 0x15d   : > { %901 = vpow2.f32 %v489_v37  ;;  %v380_v55 = vpop.xlane.xlu2 %379  ;;  %v392_v56 = vpop.xlane.xlu1 %391  ;;  %v441_v42 = vsub.f32 %v1262_v59, %v404_v38  ;;  %v442_v35 = vsub.f32 %v1192_v21, %v404_v38 }
 0x15e   : > { %v425_v47 = vsub.f32 %v1194_v22, %v380_v55  ;;  %v426_v54 = vsub.f32 %v1196_v23, %v380_v55  ;;  %v433_v57 = vsub.f32 %v1226_v41, %v392_v56  ;;  %v434_v58 = vsub.f32 %v1230_v43, %v392_v56 }
 0x15f   : > { %v491_v60 = vmul.f32 1.442695, %v441_v42  ;;  %v493_v21 = vmul.f32 1.442695, %v442_v35 }
 0x160   : > { %v1342_v40 = vpop.eup %895  ;;  %v459_v61 = vmul.f32 1.442695, %v425_v47  ;;  %v461_v63 = vmul.f32 1.442695, %v426_v54  ;;  %v475_v0 = vmul.f32 1.442695, %v433_v57 }
 0x161   : > { %v1344_v1 = vpop.eup %897  ;;  %v477_v2 = vmul.f32 1.442695, %v434_v58  ;;  %903 = vpow2.f32 %v491_v60 }
 0x162   : > { %v1346_v59 = vpop.eup %899  ;;  %905 = vpow2.f32 %v459_v61  ;;  %v531_v22 = vadd.f32 %v1344_v1, %v1342_v40 }
 0x163   : > { %v1350_v23 = vpop.eup %901  ;;  %907 = vpow2.f32 %v461_v63 }
 0x164   : > { %909 = vpow2.f32 %v475_v0  ;;  %v543_v41 = vadd.f32 %v1350_v23, %v1346_v59  ;;  %532 = vadd.xlane.f32.xlu0 %v531_v22  ;;  %v395_v43 = vpop.xlane.xlu0 %394 }
 0x165   : > { %911 = vpow2.f32 %v477_v2  ;;  %v383_v44 = vpop.xlane.xlu1 %382  ;;  %v435_v45 = vsub.f32 %v1236_v46, %v395_v43  ;;  %v436_v4 = vsub.f32 %v1240_v48, %v395_v43 }
 0x166   : > { %913 = vpow2.f32 %v493_v21  ;;  %544 = vadd.xlane.f32.xlu2 %v543_v41  ;;  %v427_v5 = vsub.f32 %v1198_v26, %v383_v44  ;;  %v428_v6 = vsub.f32 %v1200_v28, %v383_v44 }
 0x167   : > { %v1358_v8 = vpop.eup %903  ;;  %v479_v9 = vmul.f32 1.442695, %v435_v45  ;;  %v481_v51 = vmul.f32 1.442695, %v436_v4 }
 0x168   : > { %v1360_v10 = vpop.eup %905  ;;  %v463_v49 = vmul.f32 1.442695, %v427_v5  ;;  %v465_v50 = vmul.f32 1.442695, %v428_v6 }
 0x169   : > { %v1362_v53 = vpop.eup %907  ;;  %915 = vpow2.f32 %v479_v9 }
 0x16a   : > { %v1364_v46 = vpop.eup %909  ;;  %917 = vpow2.f32 %v463_v49  ;;  %v522_v48 = vadd.f32 %v1362_v53, %v1360_v10 }
 0x16b   : > { %v1368_v26 = vpop.eup %911  ;;  %919 = vpow2.f32 %v465_v50 }
 0x16c   : > { %v1370_v28 = vpop.eup %913  ;;  %921 = vpow2.f32 %v481_v51  ;;  %v534_v13 = vadd.f32 %v1368_v26, %v1364_v46  ;;  %523 = vadd.xlane.f32.xlu0 %v522_v48  ;;  %v386_v15 = vpop.xlane.xlu0 %385 }
 0x16d   : > { %v546_v18 = vadd.f32 %v1370_v28, %v1358_v8  ;;  %v429_v25 = vsub.f32 %v1206_v31, %v386_v15  ;;  %v430_v27 = vsub.f32 %v1210_v33, %v386_v15 }
 0x16e   : > { %535 = vadd.xlane.f32.xlu2 %v534_v13 }
 0x16f   : > { %v1378_v30 = vpop.eup %915  ;;  %547 = vadd.xlane.f32.xlu1 %v546_v18  ;;  %v467_v37 = vmul.f32 1.442695, %v429_v25  ;;  %v469_v36 = vmul.f32 1.442695, %v430_v27 }
 0x170   : > { %v1380_v38 = vpop.eup %917 }
 0x171   : > { %v1382_v55 = vpop.eup %919  ;;  %923 = vpow2.f32 %v467_v37 }
 0x172   : > { %v1384_v56 = vpop.eup %921  ;;  %925 = vpow2.f32 %v469_v36  ;;  %v525_v42 = vadd.f32 %v1382_v55, %v1380_v38 }
 0x173   : > { %v537_v31 = vadd.f32 %v1384_v56, %v1378_v30 }
 0x174   : > { %v377_v33 = vpop.xlane.xlu0 %376 }
 0x175   : > { %v423_v35 = vsub.f32 %v1188_v19, %v377_v33  ;;  %v424_v47 = vsub.f32 %v1190_v20, %v377_v33 }
 0x176   : > { %526 = vadd.xlane.f32.xlu2 %v525_v42 }
 0x177   : > { %v1392_v54 = vpop.eup %923  ;;  %538 = vadd.xlane.f32.xlu1 %v537_v31  ;;  %v455_v57 = vmul.f32 1.442695, %v423_v35  ;;  %v457_v58 = vmul.f32 1.442695, %v424_v47 }
 0x178   : > { %v1394_v60 = vpop.eup %925 }
 0x179   : > { %927 = vpow2.f32 %v455_v57  ;;  %v528_v61 = vadd.f32 %v1394_v60, %v1392_v54 }
 0x17a   : > { %929 = vpow2.f32 %v457_v58 }
 0x17f   : > { %v1398_v63 = vpop.eup %927  ;;  %529 = vadd.xlane.f32.xlu1 %v528_v61 }
 0x180   : > { %v1400_v0 = vpop.eup %929 }
 0x181   : > { %v519_v19 = vadd.f32 %v1400_v0, %v1398_v63 }
 0x187   : > { %520 = vadd.xlane.f32.xlu1 %v519_v19 }
 0x1a5   : > { %v551_v2 = vpop.xlane.xlu0 %550 }
 0x1ad   : > { %v554_v20 = vpop.xlane.xlu2 %553 }
 0x1b5   : > { %v557_v21 = vpop.xlane.xlu1 %556 }
 0x1bd   : > { %v560_v41 = vpop.xlane.xlu0 %559 }
 0x1c5   : > { %v563_v22 = vpop.xlane.xlu2 %562 }
 0x1c6   : > { %931 = vrcp.f32 %v563_v22 }
 0x1cc   : > { %v932_v44 = vpop.eup %931 }
 0x1cd   : > { %v566_v43 = vpop.xlane.xlu1 %565  ;;  %v611_v9 = vmul.f32 %v932_v44, %v1312_v3  ;;  %v612_v49 = vmul.f32 %v932_v44, %v1316_v7  ;;  %v185_v44 = vld [vmem:[%s1478_s2] sm:$0xff] }
 0x1ce   : > { %933 = vrcp.f32 %v566_v43 }
 0x1cf   : > { %935 = vrcp.f32 %v560_v41  ;;  %v542_v25 = vpop.xlane.xlu0 %541 }
 0x1d0   : > { %937 = vrcp.f32 %v557_v21 }
 0x1d1   : > { %939 = vrcp.f32 %v554_v20 }
 0x1d2   : > { %941 = vrcp.f32 %v551_v2 }
 0x1d4   : > { %v934_v45 = vpop.eup %933 }
 0x1d5   : > { %v613_v4 = vmul.f32 %v934_v45, %v1320_v12  ;;  %v614_v5 = vmul.f32 %v934_v45, %v1326_v16  ;;  %v936_v6 = vpop.eup %935 }
 0x1d6   : > { %v938_v50 = vpop.eup %937  ;;  %v609_v51 = vmul.f32 %v936_v6, %v1304_v39  ;;  %v610_v48 = vmul.f32 %v936_v6, %v1306_v62 }
 0x1d7   : > { %615 = vmatpush.msrb.mxu2 %v613_v4  ;;  %635 = vmatpush.msrb.mxu3 %v614_v5  ;;  %v940_v13 = vpop.eup %939  ;;  %v607_v12 = vmul.f32 %v938_v50, %v1296_v34  ;;  %v608_v16 = vmul.f32 %v938_v50, %v1298_v52  ;;  %v533_v37 = vpop.xlane.xlu0 %532 }
 0x1d8   : > { %v942_v18 = vpop.eup %941  ;;  %v605_v3 = vmul.f32 %v940_v13, %v1288_v24  ;;  %v606_v7 = vmul.f32 %v940_v13, %v1290_v29 }
 0x1d9   : > { %616 = vmatpush.msrb.mxu2 %v611_v9  ;;  %636 = vmatpush.msrb.mxu3 %v612_v49  ;;  %v545_v15 = vpop.xlane.xlu2 %544  ;;  %v603_v39 = vmul.f32 %v942_v18, %v1280_v11  ;;  %v604_v62 = vmul.f32 %v942_v18, %v1282_v14 }
 0x1da   : > { %943 = vrcp.f32 %v545_v15 }
 0x1db   : > { %617 = vmatpush.msrb.mxu2 %v609_v51  ;;  %637 = vmatpush.msrb.mxu3 %v610_v48 }
 0x1dd   : > { %618 = vmatpush.msrb.mxu2 %v607_v12  ;;  %638 = vmatpush.msrb.mxu3 %v608_v16 }
 0x1df   : > { %619 = vmatpush.msrb.mxu2 %v605_v3  ;;  %639 = vmatpush.msrb.mxu3 %v606_v7 }
 0x1e0   : > { %v944_v27 = vpop.eup %943 }
 0x1e1   : > { %620 = vmatpush.msrb.mxu2 %v603_v39  ;;  %640 = vmatpush.msrb.mxu3 %v604_v62  ;;  %v536_v52 = vpop.xlane.xlu2 %535  ;;  %v599_v11 = vmul.f32 %v944_v27, %v1346_v59  ;;  %v600_v14 = vmul.f32 %v944_v27, %v1350_v23 }
 0x1e2   : > { %v548_v34 = vpop.xlane.xlu1 %547 }
 0x1e3   : > { %945 = vrcp.f32 %v548_v34 }
 0x1e4   : > { %947 = vrcp.f32 %v542_v25 }
 0x1e5   : > { %949 = vrcp.f32 %v536_v52  ;;  %v691_v52 = vld.sshfl [vmem:[#allocation1 + $0x8] sm:$0xff pattern:$0x75316420] }
 0x1e9   : > { %v946_v36 = vpop.eup %945  ;;  %v527_v47 = vpop.xlane.xlu2 %526 }
 0x1ea   : > { %v539_v24 = vpop.xlane.xlu1 %538  ;;  %v601_v29 = vmul.f32 %v946_v36, %v1358_v8  ;;  %v602_v42 = vmul.f32 %v946_v36, %v1370_v28  ;;  %v948_v31 = vpop.eup %947  ;;  %v690_v36 = vld.sshfl [vmem:[#allocation1] sm:$0xff pattern:$0x75316420] }
 0x1eb   : > { %951 = vrcp.f32 %v539_v24  ;;  %v597_v33 = vmul.f32 %v948_v31, %v1328_v17  ;;  %v598_v35 = vmul.f32 %v948_v31, %v1332_v32  ;;  %v950_v57 = vpop.eup %949  ;;  %v524_v28 = vpop.xlane.xlu0 %523 }
 0x1ec   : > { %621 = vmatpush.msrb.mxu2 %v601_v29  ;;  %641 = vmatpush.msrb.mxu3 %v602_v42  ;;  %953 = vrcp.f32 %v533_v37  ;;  %v593_v17 = vmul.f32 %v950_v57, %v1364_v46  ;;  %v594_v32 = vmul.f32 %v950_v57, %v1368_v26 }
 0x1ed   : > { %955 = vrcp.f32 %v527_v47 }
 0x1ee   : > { %622 = vmatpush.msrb.mxu2 %v599_v11  ;;  %642 = vmatpush.msrb.mxu3 %v600_v14 }
 0x1f0   : > { %623 = vmatpush.msrb.mxu2 %v597_v33  ;;  %643 = vmatpush.msrb.mxu3 %v598_v35 }
 0x1f1   : > { %v952_v8 = vpop.eup %951 }
 0x1f2   : > { %v530_v58 = vpop.xlane.xlu1 %529  ;;  %v595_v61 = vmul.f32 %v952_v8, %v1378_v30  ;;  %v596_v59 = vmul.f32 %v952_v8, %v1384_v56  ;;  %v954_v23 = vpop.eup %953 }
 0x1f3   : > { %957 = vrcp.f32 %v530_v58  ;;  %v591_v19 = vmul.f32 %v954_v23, %v1342_v40  ;;  %v592_v20 = vmul.f32 %v954_v23, %v1344_v1  ;;  %v956_v2 = vpop.eup %955 }
 0x1f4   : > { %624 = vmatpush.msrb.mxu2 %v595_v61  ;;  %644 = vmatpush.msrb.mxu3 %v596_v59  ;;  %959 = vrcp.f32 %v524_v28  ;;  %v587_v46 = vmul.f32 %v956_v2, %v1380_v38  ;;  %v588_v26 = vmul.f32 %v956_v2, %v1382_v55 }
 0x1f6   : > { %625 = vmatpush.msrb.mxu2 %v593_v17  ;;  %645 = vmatpush.msrb.mxu3 %v594_v32 }
 0x1f8   : > { %626 = vmatpush.msrb.mxu2 %v591_v19  ;;  %646 = vmatpush.msrb.mxu3 %v592_v20 }
 0x1f9   : > { %v958_v30 = vpop.eup %957 }
 0x1fa   : > { %v521_v56 = vpop.xlane.xlu1 %520  ;;  %v589_v21 = vmul.f32 %v958_v30, %v1392_v54  ;;  %v590_v22 = vmul.f32 %v958_v30, %v1394_v60  ;;  %v960_v41 = vpop.eup %959 }
 0x1fb   : > { %961 = vrcp.f32 %v521_v56  ;;  %v585_v40 = vmul.f32 %v960_v41, %v1360_v10  ;;  %v586_v1 = vmul.f32 %v960_v41, %v1362_v53 }
 0x1fc   : > { %627 = vmatpush.msrb.mxu2 %v589_v21  ;;  %647 = vmatpush.msrb.mxu3 %v590_v22 }
 0x1fe   : > { %628 = vmatpush.msrb.mxu2 %v587_v46  ;;  %648 = vmatpush.msrb.mxu3 %v588_v26 }
 0x200   : > { %629 = vmatpush.msrb.mxu2 %v585_v40  ;;  %649 = vmatpush.msrb.mxu3 %v586_v1 }
 0x201   : > { %v962_v43 = vpop.eup %961 }
 0x202   : > { %v583_v54 = vmul.f32 %v962_v43, %v1398_v63  ;;  %v584_v60 = vmul.f32 %v962_v43, %v1400_v0 }
 0x204   : > { %630 = vmatpush.msrb.mxu2 %v583_v54  ;;  %650 = vmatpush.msrb.mxu3 %v584_v60 }
 0x205   : > { %631 = vmatmul.f32.vlgmr.msrb.gmra.mxu2 %v185_v44  ;;  %651 = vmatmul.f32.vlgmr.msrb.gmra.mxu3 %v185_v44 }
 0x288   : > { %v632_v38 = vpop.f32.mrf.mxu2  ;;  %v652_v55 = vpop.f32.mrf.mxu3 }
 0x289   : > { %v655_v10 = vadd.f32 1e-09, %v632_v38  ;;  %v656_v45 = vadd.f32 1e-09, %v652_v55 }
 0x28b   : > { %963 = vrcp.f32 %v655_v10  ;;  %v668_v6 = vand.u32 2147483648, %v655_v10  ;;  %v666_v50 = vand.u32 2147483647, %v655_v10  ;;  %v682_v51 = vand.u32 2147483648, %v656_v45 }
 0x28c   : > { %965 = vrcp.f32 %v656_v45  ;;  %v680_v13 = vand.u32 2147483647, %v656_v45  ;;  %vm662_vm4 = vweird.f32 %v655_v10  ;;  %vm676_vm6 = vweird.f32 %v656_v45 }
 0x28d   : > { %v669_v12 = vor.u32 1.1754944e-38, %v668_v6  ;;  %vm667_vm7 = vcmp.eq.f32.partialorder %v666_v50, 8.507059e+37  ;;  %v683_v3 = vor.u32 1.1754944e-38, %v682_v51 }
 0x28e   : > { %vm681_vm9 = vcmp.eq.f32.partialorder %v680_v13, 8.507059e+37 }
 0x291   : > { %v964_v53 = vpop.eup %963 }
 0x292   : > { %v966_v4 = vpop.eup %965  ;;  %v658_v63 = vmul.f32 %v964_v53, %v655_v10  ;;  %vm663_vm2 = vweird.f32 %v964_v53 }
 0x293   : > { %v672_v5 = vmul.f32 %v966_v4, %v656_v45  ;;  %vm677_vm3 = vweird.f32 %v966_v4  ;;  %vm664_vm5 = vmor %vm662_vm4, %vm663_vm2 }
 0x294   : > { %v659_v0 = vsub.f32 1.0, %v658_v63  ;;  %vm678_vm8 = vmor %vm676_vm6, %vm677_vm3 }
 0x295   : > { %v673_v9 = vsub.f32 1.0, %v672_v5 }
 0x296   : > { %v660_v49 = vmul.f32 %v964_v53, %v659_v0 }
 0x297   : > { %v674_v48 = vmul.f32 %v966_v4, %v673_v9 }
 0x298   : > { %v661_v15 = vadd.f32 %v964_v53, %v660_v49 }
 0x299   : > { %v675_v16 = vadd.f32 %v966_v4, %v674_v48 }
 0x29a   : > { %v665_v18 = vsel %vm664_vm5, %v964_v53, %v661_v15 }
 0x29b   : > { %v670_v7 = vsel %vm667_vm7, %v669_v12, %v665_v18  ;;  %v679_v25 = vsel %vm678_vm8, %v966_v4, %v675_v16 }
 0x29c   : > { %v685_v39 = vperm.slane %v670_v7, 4  ;;  %v684_v62 = vsel %vm681_vm9, %v683_v3, %v679_v25 }
 0x29d   : > { %v686_v34 = vperm.slane %v684_v62, 4 }
 0x29e   : > { %v687_v27 = vmul.f32 %v685_v39, %v632_v38 }
 0x29f   : > { %v688_v37 = vmul.f32 %v686_v34, %v652_v55 }
 0x2a0   : > { %v694_v29 = vadd.f32 %v690_v36, %v687_v27 }
 0x2a1   : > { %v695_v24 = vadd.f32 %v691_v52, %v688_v37 }
 0x2a3   : > { %v698_v42 = vrot.slane %v695_v24, 4 }
 0x2a5   : > { %v699_v31 = vsel %vm240_vm0, %v694_v29, %v698_v42 }
 0x2a6   : > { %701 = vst [vmem:[%s163_s6] sm:$0xff] %v699_v31 }
 0x2a7   : > { %994 = shalt.err (!%p991_p3)
}
 0x2a8   : > { %828 = dma.vmem_to_hbm [thread:$0]  (%p1089_p5), %s717_s7, 128, %s719_s8, %s703_s16  }
 0x2a9 PF: > { %p834_p4 = scmp.ge.s32.totalorder %s1029_s15, 2  ;;  %s730_s25 = sand.u32 1, %s1017_s12  }
 0x2aa   : > { %s731_s26 = scalar_lea.sflag [#allocation3], %s730_s25 }
 0x2ab   : > { %p831_p7 = pnand %p834_p4, %p1093_p6 }
 0x2ad   : > { %p832_p8 = pneg %p831_p7 }
 0x2af   : > { %1012 = dma.done.wait (%p832_p8), %s731_s26, 128  }
 0x2b0   : > { %1014 = vsyncadd (%p832_p8), %s731_s26, 4294967168  ;;  %p13_p9 = scmp.ge.s32.totalorder %s1076_s18, 4   ;;  %s1482_s12 = smov %s1021_s13 }
 0x2b1   : > { %s1483_s13 = smov %s1025_s14  ;;  %s1484_s14 = smov %s1087_s21 }
 0x2b2   : > { %s1485_s15 = smov %s1076_s18  ;;  %15 = sbr.rel (!%p13_p9) target bundleno = 3 (0x3), region = 67 }
 0x2b7   :  { %737 = vsyncpa [#allocation3], 1 }
 0x2b8   :  { %739 = vsyncpa [#allocation3 + $0x1], 1 }

</bundles_post_ra>
